<compile_context>
chip_gen: v5e
topology: v5e:2x2
jax: 0.10.0
libtpu: 0.0.40
codegen_flags: <defaults>
</compile_context>

<pallas_src>
import functools

import jax
import jax.numpy as jnp
from jax.experimental import pallas as pl
from jax.experimental.pallas import tpu as pltpu


def _mlp_kernel(x_ref, w1_ref, b1_ref, w2_ref, b2_ref, w3_ref, b3_ref, o_ref):
    # Layer 1: Linear (BN folded into W/b) + ReLU.  Dropout = identity (eval).
    h1 = jnp.dot(x_ref[...], w1_ref[...],
                 preferred_element_type=jnp.float32) + b1_ref[...]
    h1 = jnp.maximum(h1, 0.0)

    # Layer 2: Linear (BN folded) + ReLU.  Dropout = identity (eval).
    h2 = jnp.dot(h1.astype(w2_ref.dtype), w2_ref[...],
                 preferred_element_type=jnp.float32) + b2_ref[...]
    h2 = jnp.maximum(h2, 0.0)

    # Layer 3: Linear.
    o_ref[...] = (jnp.dot(h2.astype(w3_ref.dtype), w3_ref[...],
                          preferred_element_type=jnp.float32)
                  + b3_ref[...]).astype(o_ref.dtype)


@functools.partial(jax.jit, static_argnames=("tb", "vmem_limit_bytes"))
def _fnn0_call(x_in, w1, b1, w2, b2, w3, b3, *, tb, vmem_limit_bytes):
    b_pad, d_in = x_in.shape
    d_h1 = w1.shape[1]
    d_h2 = w2.shape[1]
    d_out = w3.shape[1]

    def _resident(shape):
        # Constant block index -> Pallas keeps this operand VMEM-resident
        # across grid steps (loaded once, never re-DMA'd).
        return pl.BlockSpec(shape, lambda i: (0, 0))

    flops = 2 * b_pad * (d_in * d_h1 + d_h1 * d_h2 + d_h2 * d_out)
    bytes_accessed = (
        x_in.size * x_in.dtype.itemsize
        + sum(int(v.size) * v.dtype.itemsize for v in (w1, b1, w2, b2, w3, b3))
        + b_pad * d_out * 4)

    return pl.pallas_call(
        _mlp_kernel,
        out_shape=jax.ShapeDtypeStruct((b_pad, d_out), jnp.float32),
        grid=(b_pad // tb,),
        in_specs=[
            pl.BlockSpec((tb, d_in), lambda i: (i, 0)),   # streamed x tile
            _resident(w1.shape), _resident(b1.shape),
            _resident(w2.shape), _resident(b2.shape),
            _resident(w3.shape), _resident(b3.shape),
        ],
        out_specs=pl.BlockSpec((tb, d_out), lambda i: (i, 0)),
        compiler_params=pltpu.CompilerParams(
            dimension_semantics=("parallel",),
            vmem_limit_bytes=vmem_limit_bytes),
        cost_estimate=pl.CostEstimate(
            flops=flops, bytes_accessed=bytes_accessed, transcendentals=0),
    )(x_in, w1, b1, w2, b2, w3, b3)


def fiber_optic_fnn0_forward(x, kp, *, tb=512,
                             vmem_limit_bytes=32 * 1024 * 1024):
    """x: [B, input_dim] f32.  kp: folded kernel params (see fold_params)."""
    B = x.shape[0]
    compute_dtype = kp["w1"].dtype

    # Batch tile: default 512 (multiple of 128 and 256); for small batches fall
    # back to the smallest sublane-aligned (multiple-of-8) tile covering B.
    tb = min(tb, max(8, -(-B // 8) * 8))
    b_pad = -(-B // tb) * tb

    x_in = x.astype(compute_dtype)
    if b_pad != B:
        x_in = jnp.pad(x_in, ((0, b_pad - B), (0, 0)))

    out = _fnn0_call(x_in, kp["w1"], kp["b1"], kp["w2"], kp["b2"],
                     kp["w3"], kp["b3"],
                     tb=tb, vmem_limit_bytes=vmem_limit_bytes)
    return out[:B] if b_pad != B else out


def fold_params(p, compute_dtype=jnp.bfloat16):
    """Fold eval-mode BatchNorm into the preceding Linear and cast weights to
    the MXU compute dtype.  Biases stay f32 (applied on the f32 accumulator)."""
    w1 = (p["w1"] * p["bn1_scale"]).astype(compute_dtype)
    b1 = (p["b1"] * p["bn1_scale"] + p["bn1_shift"]).astype(jnp.float32)
    w2 = (p["w2"] * p["bn2_scale"]).astype(compute_dtype)
    b2 = (p["b2"] * p["bn2_scale"] + p["bn2_shift"]).astype(jnp.float32)
    w3 = p["w3"].astype(compute_dtype)
    b3 = p["b3"].astype(jnp.float32)
    return dict(w1=w1, b1=b1, w2=w2, b2=b2, w3=w3, b3=b3)


def make_params(key, input_dim, hidden_dim, output_dim, eps=1e-5):
    """Deterministic synthetic parameters (same shapes as the PyTorch module).
    Linear weights are stored pre-transposed as [in_features, out_features]."""
    h2 = hidden_dim // 2
    ks = jax.random.split(key, 14)

    def lin(kw, kb, fan_in, fan_out):
        bound = 1.0 / jnp.sqrt(fan_in)
        w = jax.random.uniform(kw, (fan_in, fan_out), jnp.float32, -bound, bound)
        b = jax.random.uniform(kb, (1, fan_out), jnp.float32, -bound, bound)
        return w, b

    w1, b1 = lin(ks[0], ks[1], input_dim, hidden_dim)
    w2, b2 = lin(ks[2], ks[3], hidden_dim, h2)
    w3, b3 = lin(ks[4], ks[5], h2, output_dim)

    def bn(kg, kb_, km, kv, dim):
        gamma = 1.0 + 0.1 * jax.random.normal(kg, (1, dim), jnp.float32)
        beta = 0.1 * jax.random.normal(kb_, (1, dim), jnp.float32)
        r_mean = 0.1 * jax.random.normal(km, (1, dim), jnp.float32)
        r_var = jnp.abs(1.0 + 0.1 * jax.random.normal(kv, (1, dim), jnp.float32))
        scale = gamma / jnp.sqrt(r_var + eps)     # eval-mode BN: y = x*scale+shift
        shift = beta - r_mean * scale
        return scale, shift

    bn1_scale, bn1_shift = bn(ks[6], ks[7], ks[8], ks[9], hidden_dim)
    bn2_scale, bn2_shift = bn(ks[10], ks[11], ks[12], ks[13], h2)

    return dict(w1=w1, b1=b1, bn1_scale=bn1_scale, bn1_shift=bn1_shift,
                w2=w2, b2=b2, bn2_scale=bn2_scale, bn2_shift=bn2_shift,
                w3=w3, b3=b3)


def reference_forward_mirror(x, kp):
    """Pure-JAX mirror of the kernel math (same bf16 casts, f32 accumulation)."""
    cd = kp["w1"].dtype
    h1 = jnp.maximum(jnp.dot(x.astype(cd), kp["w1"],
                             preferred_element_type=jnp.float32) + kp["b1"], 0.0)
    h2 = jnp.maximum(jnp.dot(h1.astype(cd), kp["w2"],
                             preferred_element_type=jnp.float32) + kp["b2"], 0.0)
    return jnp.dot(h2.astype(cd), kp["w3"],
                   preferred_element_type=jnp.float32) + kp["b3"]


def reference_forward_f32(x, p):
    """Full-f32 reference of the original module semantics (eval mode)."""
    h1 = jnp.maximum((x @ p["w1"] + p["b1"]) * p["bn1_scale"] + p["bn1_shift"], 0.0)
    h2 = jnp.maximum((h1 @ p["w2"] + p["b2"]) * p["bn2_scale"] + p["bn2_shift"], 0.0)
    return h2 @ p["w3"] + p["b3"]


if __name__ == "__main__":
    input_dim, hidden_dim, output_dim = 16, 32, 4
    batch = 8

    key = jax.random.PRNGKey(0)
    k_x, k_p = jax.random.split(key)
    x = jax.random.normal(k_x, (batch, input_dim), jnp.float32)
    params = make_params(k_p, input_dim, hidden_dim, output_dim)
    kparams = fold_params(params)

    out = fiber_optic_fnn0_forward(x, kparams)
    out = jax.block_until_ready(out)

    assert out.shape == (batch, output_dim)
    # Exact-math check against a JAX mirror of the kernel (same bf16 casts).
    ref = reference_forward_mirror(x, kparams)
    assert jnp.allclose(out, ref, atol=1e-4, rtol=1e-4)
    # Coarse check against the full-f32 module semantics (bf16 weight error).
    ref32 = reference_forward_f32(x, params)
    assert jnp.allclose(out, ref32, atol=5e-2, rtol=5e-2)

    print("KERNEL_OK")
</pallas_src>

<mosaic_0001>
module attributes {stable_mosaic.version = 11 : i64} {
  func.func @_mlp_kernel(%arg0: i32, %arg1: memref<8x16xbf16, #tpu.memory_space<vmem>>, %arg2: memref<16x32xbf16, #tpu.memory_space<vmem>>, %arg3: memref<1x32xf32, #tpu.memory_space<vmem>>, %arg4: memref<32x16xbf16, #tpu.memory_space<vmem>>, %arg5: memref<1x16xf32, #tpu.memory_space<vmem>>, %arg6: memref<16x4xbf16, #tpu.memory_space<vmem>>, %arg7: memref<1x4xf32, #tpu.memory_space<vmem>>, %arg8: memref<8x4xf32, #tpu.memory_space<vmem>>) attributes {dimension_semantics = [#tpu.dimension_semantics<parallel>], iteration_bounds = array<i64: 1>, scalar_prefetch = 0 : i64, scratch_operands = 0 : i64, tpu.core_type = #tpu.core_type<tc>, window_params = [{transform_indices = @transform_0, window_bounds = array<i64: 8, 16>}, {pipeline_mode = #tpu.pipeline_mode<synchronous>, transform_indices = @transform_1, window_bounds = array<i64: 16, 32>}, {pipeline_mode = #tpu.pipeline_mode<synchronous>, transform_indices = @transform_2, window_bounds = array<i64: 1, 32>}, {pipeline_mode = #tpu.pipeline_mode<synchronous>, transform_indices = @transform_3, window_bounds = array<i64: 32, 16>}, {pipeline_mode = #tpu.pipeline_mode<synchronous>, transform_indices = @transform_4, window_bounds = array<i64: 1, 16>}, {pipeline_mode = #tpu.pipeline_mode<synchronous>, transform_indices = @transform_5, window_bounds = array<i64: 16, 4>}, {pipeline_mode = #tpu.pipeline_mode<synchronous>, transform_indices = @transform_6, window_bounds = array<i64: 1, 4>}, {transform_indices = @transform_7, window_bounds = array<i64: 8, 4>}]} {
    %c0 = arith.constant 0 : index
    %c0_0 = arith.constant 0 : index
    %0 = vector.load %arg1[%c0, %c0_0] : memref<8x16xbf16, #tpu.memory_space<vmem>>, vector<8x16xbf16>
    %c0_1 = arith.constant 0 : index
    %c0_2 = arith.constant 0 : index
    %1 = vector.load %arg2[%c0_1, %c0_2] : memref<16x32xbf16, #tpu.memory_space<vmem>>, vector<16x32xbf16>
    %cst = arith.constant dense<0.000000e+00> : vector<8x32xf32>
    %2 = tpu.matmul %0, %1, %cst {dimension_numbers = #tpu.dot_dimension_numbers<[1], [0], [0], [1], [0, 0, 1, 1], [], []>} : vector<8x16xbf16>, vector<16x32xbf16>, vector<8x32xf32> -> vector<8x32xf32>
    %c0_3 = arith.constant 0 : index
    %c0_4 = arith.constant 0 : index
    %3 = vector.load %arg3[%c0_3, %c0_4] : memref<1x32xf32, #tpu.memory_space<vmem>>, vector<1x32xf32>
    %4 = vector.broadcast %3 : vector<1x32xf32> to vector<8x32xf32>
    %5 = arith.addf %2, %4 : vector<8x32xf32>
    %cst_5 = arith.constant 0.000000e+00 : f32
    %6 = vector.broadcast %cst_5 : f32 to vector<8x32xf32>
    %7 = arith.maximumf %5, %6 : vector<8x32xf32>
    %8 = arith.truncf %7 : vector<8x32xf32> to vector<8x32xbf16>
    %c0_6 = arith.constant 0 : index
    %c0_7 = arith.constant 0 : index
    %9 = vector.load %arg4[%c0_6, %c0_7] : memref<32x16xbf16, #tpu.memory_space<vmem>>, vector<32x16xbf16>
    %cst_8 = arith.constant dense<0.000000e+00> : vector<8x16xf32>
    %10 = tpu.matmul %8, %9, %cst_8 {dimension_numbers = #tpu.dot_dimension_numbers<[1], [0], [0], [1], [0, 0, 1, 1], [], []>} : vector<8x32xbf16>, vector<32x16xbf16>, vector<8x16xf32> -> vector<8x16xf32>
    %c0_9 = arith.constant 0 : index
    %c0_10 = arith.constant 0 : index
    %11 = vector.load %arg5[%c0_9, %c0_10] : memref<1x16xf32, #tpu.memory_space<vmem>>, vector<1x16xf32>
    %12 = vector.broadcast %11 : vector<1x16xf32> to vector<8x16xf32>
    %13 = arith.addf %10, %12 : vector<8x16xf32>
    %cst_11 = arith.constant 0.000000e+00 : f32
    %14 = vector.broadcast %cst_11 : f32 to vector<8x16xf32>
    %15 = arith.maximumf %13, %14 : vector<8x16xf32>
    %16 = arith.truncf %15 : vector<8x16xf32> to vector<8x16xbf16>
    %c0_12 = arith.constant 0 : index
    %c0_13 = arith.constant 0 : index
    %17 = vector.load %arg6[%c0_12, %c0_13] : memref<16x4xbf16, #tpu.memory_space<vmem>>, vector<16x4xbf16>
    %cst_14 = arith.constant dense<0.000000e+00> : vector<8x4xf32>
    %18 = tpu.matmul %16, %17, %cst_14 {dimension_numbers = #tpu.dot_dimension_numbers<[1], [0], [0], [1], [0, 0, 1, 1], [], []>} : vector<8x16xbf16>, vector<16x4xbf16>, vector<8x4xf32> -> vector<8x4xf32>
    %c0_15 = arith.constant 0 : index
    %c0_16 = arith.constant 0 : index
    %19 = vector.load %arg7[%c0_15, %c0_16] : memref<1x4xf32, #tpu.memory_space<vmem>>, vector<1x4xf32>
    %20 = vector.broadcast %19 : vector<1x4xf32> to vector<8x4xf32>
    %21 = arith.addf %18, %20 : vector<8x4xf32>
    %c0_17 = arith.constant 0 : index
    %c0_18 = arith.constant 0 : index
    %22 = vector.load %arg8[%c0_17, %c0_18] : memref<8x4xf32, #tpu.memory_space<vmem>>, vector<8x4xf32>
    tpu.vector_store %arg8[%c0_17, %c0_18], %21 {strides = array<i32>} : memref<8x4xf32, #tpu.memory_space<vmem>>, vector<8x4xf32>,
    return
  }
  func.func @transform_0(%arg0: i32) -> (i32, i32) {
    %c0_i32 = arith.constant 0 : i32
    %c0_i32_0 = arith.constant 0 : i32
    return %arg0, %c0_i32 : i32, i32
  }
  func.func @transform_1(%arg0: i32) -> (i32, i32) {
    %c0_i32 = arith.constant 0 : i32
    %c0_i32_0 = arith.constant 0 : i32
    %c0_i32_1 = arith.constant 0 : i32
    return %c0_i32, %c0_i32_0 : i32, i32
  }
  func.func @transform_2(%arg0: i32) -> (i32, i32) {
    %c0_i32 = arith.constant 0 : i32
    %c0_i32_0 = arith.constant 0 : i32
    %c0_i32_1 = arith.constant 0 : i32
    return %c0_i32, %c0_i32_0 : i32, i32
  }
  func.func @transform_3(%arg0: i32) -> (i32, i32) {
    %c0_i32 = arith.constant 0 : i32
    %c0_i32_0 = arith.constant 0 : i32
    %c0_i32_1 = arith.constant 0 : i32
    return %c0_i32, %c0_i32_0 : i32, i32
  }
  func.func @transform_4(%arg0: i32) -> (i32, i32) {
    %c0_i32 = arith.constant 0 : i32
    %c0_i32_0 = arith.constant 0 : i32
    %c0_i32_1 = arith.constant 0 : i32
    return %c0_i32, %c0_i32_0 : i32, i32
  }
  func.func @transform_5(%arg0: i32) -> (i32, i32) {
    %c0_i32 = arith.constant 0 : i32
    %c0_i32_0 = arith.constant 0 : i32
    %c0_i32_1 = arith.constant 0 : i32
    return %c0_i32, %c0_i32_0 : i32, i32
  }
  func.func @transform_6(%arg0: i32) -> (i32, i32) {
    %c0_i32 = arith.constant 0 : i32
    %c0_i32_0 = arith.constant 0 : i32
    %c0_i32_1 = arith.constant 0 : i32
    return %c0_i32, %c0_i32_0 : i32, i32
  }
  func.func @transform_7(%arg0: i32) -> (i32, i32) {
    %c0_i32 = arith.constant 0 : i32
    %c0_i32_0 = arith.constant 0 : i32
    return %arg0, %c0_i32 : i32, i32
  }
}

</mosaic_0001>

<bundles_post_ra>
// kernel: _fnn0_call.1
= control target key start
LH: loop header
LB: loop body
LE: loop exit
PB: predicated region body
PF: predicated region fallthrough
CT: control target
= control target key end

     0   :  { %vm40_vm0 = vcmask 130048   ;;  %vm79_vm1 = vcmask 261120   ;;  %vm126_vm2 = vcmask 31744   ;;  %s227_s1 = inlined_call_operand.vmem [shape: bf16[16,32], index: 1, kind: input, shape index: {}]   ;;  %s228_s0 = inlined_call_operand.vmem [shape: bf16[8,16], index: 0, kind: input, shape index: {}]   ;;  %s229_s2 = inlined_call_operand.vmem [shape: f32[1,32], index: 2, kind: input, shape index: {}]   ;;  %s230_s4 = inlined_call_operand.vmem [shape: f32[1,16], index: 4, kind: input, shape index: {}]   ;;  %s231_s3 = inlined_call_operand.vmem [shape: bf16[32,16], index: 3, kind: input, shape index: {}]   ;;  %s232_s6 = inlined_call_operand.vmem [shape: f32[1,4], index: 6, kind: input, shape index: {}]   ;;  %s233_s5 = inlined_call_operand.vmem [shape: bf16[16,4], index: 5, kind: input, shape index: {}]   ;;  %s234_s7 = inlined_call_operand.vmem [shape: f32[8,4], index: 7, kind: output, shape index: {}]  }
   0x1   :  { %v151_v0 = vld [vmem:[%s227_s1] sm:$0xff]  ;;  %v153_v2 = vld [vmem:[%s231_s3 + $0x8] sm:$0xff] }
   0x2   :  { %51 = vmatpush.bf16.msra.mxu0 %v151_v0  ;;  %v27_v1 = vld [vmem:[%s228_s0] sm:$0xf]  ;;  %89 = vmatpush.bf16.msra.mxu1 %v153_v2 }
   0x3   :  { %v152_v3 = vld [vmem:[%s231_s3] sm:$0xff] }
   0x4   :  { %v155_v4 = vld [vmem:[%s229_s2] ss:$0 sm:$0xff] }
   0x5   :  { %136 = vmatmul.msk.bf16.vlgmr.msra.gmra.mxu0 %vm40_vm0, %v27_v1  ;;  %v154_v10 = vld [vmem:[%s233_s5] sm:$0xff] }
   0x6   :  { %90 = vmatpush.bf16.msra.mxu1 %v152_v3  ;;  %120 = vmatpush.bf16.msra.mxu2 %v154_v10  ;;  %v156_v11 = vld [vmem:[%s230_s4] ss:$0 sm:$0xff] }
   0x7   :  { %v157_v17 = vld [vmem:[%s232_s6] ss:$0 sm:$0xff] }
  0x82   :  { %v53_v5 = vpop.f32.mrf.mxu0 }
  0x83   :  { %v54_v6 = vadd.f32 %v155_v4, %v53_v5 }
  0x85   :  { %v57_v7 = vmax.f32 %v54_v6, 0.0 }
  0x87   :  { %v58_v8 = vpack.c.bf16 %v57_v7, %v57_v7 }
  0x89   :  { %145 = vmatmul.msk.bf16.vlgmr.msra.gmra.mxu1 %vm79_vm1, %v58_v8 }
  0x8a   :  { %v55_v9 = vpop.f32.mrf.mxu0 }
 0x106   :  { %v92_v12 = vpop.f32.mrf.mxu1 }
 0x107   :  { %v93_v13 = vadd.f32 %v156_v11, %v92_v12 }
 0x109   :  { %v96_v14 = vmax.f32 %v93_v13, 0.0 }
 0x10b   :  { %v97_v15 = vpack.c.bf16 %v96_v14, %v96_v14 }
 0x10d   :  { %150 = vmatmul.msk.bf16.vlgmr.msra.gmra.mxu2 %vm40_vm0, %v97_v15 }
 0x10e   :  { %v94_v16 = vpop.f32.mrf.mxu1 }
 0x190   :  { %v122_v18 = vpop.f32.mrf.mxu2 }
 0x191   :  { %v123_v19 = vadd.f32 %v157_v17, %v122_v18 }
 0x193   :  { %127 = vst.msk [vmem:[%s234_s7] sm:$0xff] %vm126_vm2, %v123_v19 }
 0x198   :  { %v124_v20 = vpop.f32.mrf.mxu2 }

</bundles_post_ra>
